<compile_context>
chip_gen: v6e
topology: v6e:2x2x1
jax: 0.10.0
libtpu: 0.0.40
codegen_flags: <defaults>
</compile_context>

<pallas_src>
import math

import jax
import jax.numpy as jnp
from jax.experimental import pallas as pl
from jax.experimental.pallas import tpu as pltpu


def make_rope_table(dim, max_len=512, base=10000.0, dtype=jnp.float32):
    """Deterministic pe buffer, identical to the PyTorch __init__."""
    position = jnp.arange(0, max_len, dtype=jnp.float32)[:, None]            # (L, 1)
    div_term = jnp.exp(
        jnp.arange(0, dim, 2, dtype=jnp.float32) * -(math.log(base) / dim)   # (dim/2,)
    )
    angles = position * div_term                                             # (L, dim/2)
    pe = jnp.zeros((max_len, dim), dtype=jnp.float32)
    pe = pe.at[:, 0::2].set(jnp.sin(angles))
    pe = pe.at[:, 1::2].set(jnp.cos(angles))
    return pe.astype(dtype)


def _rope_kernel(x_ref, pe_ref, o_ref):
    # x_ref / o_ref: (TS, D) VMEM block for one (batch, seq-tile) grid point.
    # pe_ref:        (TS, D) VMEM block (same seq-tile, shared across batch).
    x = x_ref[...]
    pe = pe_ref[...]
    half = x.shape[-1] // 2

    # step 1: additive positional encoding
    x = x + pe

    # step 2: rotary mix of the two contiguous halves, stored directly into
    # the output halves (avoids a concat + full-width temporary).
    xr = x[:, :half]
    xi = x[:, half:]
    pr = pe[:, :half]
    pi = pe[:, half:]

    o_ref[:, :half] = (xr * pr - xi * pi).astype(o_ref.dtype)
    o_ref[:, half:] = (xr * pi + xi * pr).astype(o_ref.dtype)


def _pick_seq_tile(S, D, itemsize):
    """Largest sequence tile that divides S, is a multiple of 8 (sublane
    alignment), and keeps a single (TS, D) buffer at or under ~2 MiB."""
    if S % 8 != 0:
        return S  # full-extent block still satisfies the layout rule
    max_rows = max(8, (2 << 20) // max(D * itemsize, 1))
    ts, cand = 8, 8
    limit = min(S, max_rows)
    while cand <= limit:
        if S % cand == 0:
            ts = cand
        cand += 8
    return ts


def rotary_positional_encoding(x, pe, *, seq_tile=None):
    """x: (B, S, D) array; pe: (max_len, D) table. Returns (B, S, D)."""
    B, S, D = x.shape
    assert D % 2 == 0, "dim must be even (two rotary halves)"
    # glue: static slice of the table to seq_len, cast to compute dtype
    pe_slice = pe[:S, :].astype(x.dtype)

    TS = seq_tile or _pick_seq_tile(S, D, jnp.dtype(x.dtype).itemsize)
    grid = (B, S // TS)

    return pl.pallas_call(
        _rope_kernel,
        out_shape=jax.ShapeDtypeStruct((B, S, D), x.dtype),
        grid_spec=pltpu.PrefetchScalarGridSpec(
            num_scalar_prefetch=0,
            grid=grid,
            in_specs=[
                pl.BlockSpec((pl.Squeezed(), TS, D), lambda b, s: (b, s, 0)),
                pl.BlockSpec((TS, D), lambda b, s: (s, 0)),
            ],
            out_specs=pl.BlockSpec((pl.Squeezed(), TS, D), lambda b, s: (b, s, 0)),
        ),
        compiler_params=pltpu.CompilerParams(
            dimension_semantics=("parallel", "parallel"),
        ),
    )(x, pe_slice)


def _reference(x, pe):
    """Pure-JAX mirror of the PyTorch forward (for the correctness check)."""
    S = x.shape[1]
    pe_s = pe[:S][None, :, :]
    x = x + pe_s
    half = x.shape[-1] // 2
    xr, xi = x[..., :half], x[..., half:]
    pr, pi = pe_s[..., :half], pe_s[..., half:]
    return jnp.concatenate([xr * pr - xi * pi, xr * pi + xi * pr], axis=-1)


if __name__ == "__main__":
    batch, seq_len, dim = 2, 8, 32
    max_len, base = 512, 10000.0

    key = jax.random.PRNGKey(0)
    x = jax.random.normal(key, (batch, seq_len, dim), dtype=jnp.float32)

    pe = make_rope_table(dim, max_len=max_len, base=base)

    out = rotary_positional_encoding(x, pe)
    out = jax.block_until_ready(out)

    ref = _reference(x, pe)
    assert out.shape == (batch, seq_len, dim)
    assert jnp.allclose(out, ref, atol=1e-5, rtol=1e-5)

    print("KERNEL_OK")
</pallas_src>

<mosaic_0001>
module attributes {stable_mosaic.version = 11 : i64} {
  func.func @_rope_kernel(%arg0: i32, %arg1: i32, %arg2: memref<1x8x32xf32, #tpu.memory_space<vmem>>, %arg3: memref<8x32xf32, #tpu.memory_space<vmem>>, %arg4: memref<1x8x32xf32, #tpu.memory_space<vmem>>) attributes {dimension_semantics = [#tpu.dimension_semantics<parallel>, #tpu.dimension_semantics<parallel>], iteration_bounds = array<i64: 2, 1>, scalar_prefetch = 0 : i64, scratch_operands = 0 : i64, tpu.core_type = #tpu.core_type<tc>, window_params = [{transform_indices = @transform_0, window_bounds = array<i64: 1, 8, 32>}, {transform_indices = @transform_1, window_bounds = array<i64: 8, 32>}, {transform_indices = @transform_2, window_bounds = array<i64: 1, 8, 32>}]} {
    %c0 = arith.constant 0 : index
    %c0_0 = arith.constant 0 : index
    %c0_1 = arith.constant 0 : index
    %0 = vector.load %arg2[%c0, %c0_0, %c0_1] : memref<1x8x32xf32, #tpu.memory_space<vmem>>, vector<1x8x32xf32>
    %1 = vector.shape_cast %0 : vector<1x8x32xf32> to vector<8x32xf32>
    %c0_2 = arith.constant 0 : index
    %c0_3 = arith.constant 0 : index
    %2 = vector.load %arg3[%c0_2, %c0_3] : memref<8x32xf32, #tpu.memory_space<vmem>>, vector<8x32xf32>
    %3 = arith.addf %1, %2 : vector<8x32xf32>
    %4 = vector.extract_strided_slice %3 {offsets = [0, 0], sizes = [8, 16], strides = [1, 1]} : vector<8x32xf32> to vector<8x16xf32>
    %5 = vector.extract_strided_slice %3 {offsets = [0, 16], sizes = [8, 16], strides = [1, 1]} : vector<8x32xf32> to vector<8x16xf32>
    %6 = vector.extract_strided_slice %2 {offsets = [0, 0], sizes = [8, 16], strides = [1, 1]} : vector<8x32xf32> to vector<8x16xf32>
    %7 = vector.extract_strided_slice %2 {offsets = [0, 16], sizes = [8, 16], strides = [1, 1]} : vector<8x32xf32> to vector<8x16xf32>
    %8 = arith.mulf %4, %6 : vector<8x16xf32>
    %9 = arith.mulf %5, %7 : vector<8x16xf32>
    %10 = arith.subf %8, %9 : vector<8x16xf32>
    %c0_4 = arith.constant 0 : index
    %c0_5 = arith.constant 0 : index
    %c0_6 = arith.constant 0 : index
    %11 = vector.load %arg4[%c0_4, %c0_5, %c0_6] : memref<1x8x32xf32, #tpu.memory_space<vmem>>, vector<1x8x16xf32>
    %12 = vector.shape_cast %11 : vector<1x8x16xf32> to vector<8x16xf32>
    %13 = vector.shape_cast %10 : vector<8x16xf32> to vector<1x8x16xf32>
    tpu.vector_store %arg4[%c0_4, %c0_5, %c0_6], %13 {strides = array<i32>} : memref<1x8x32xf32, #tpu.memory_space<vmem>>, vector<1x8x16xf32>,
    %14 = arith.mulf %4, %7 : vector<8x16xf32>
    %15 = arith.mulf %5, %6 : vector<8x16xf32>
    %16 = arith.addf %14, %15 : vector<8x16xf32>
    %c0_7 = arith.constant 0 : index
    %c0_8 = arith.constant 0 : index
    %c16 = arith.constant 16 : index
    %17 = vector.load %arg4[%c0_7, %c0_8, %c16] : memref<1x8x32xf32, #tpu.memory_space<vmem>>, vector<1x8x16xf32>
    %18 = vector.shape_cast %17 : vector<1x8x16xf32> to vector<8x16xf32>
    %19 = vector.shape_cast %16 : vector<8x16xf32> to vector<1x8x16xf32>
    tpu.vector_store %arg4[%c0_7, %c0_8, %c16], %19 {strides = array<i32>} : memref<1x8x32xf32, #tpu.memory_space<vmem>>, vector<1x8x16xf32>,
    return
  }
  func.func @transform_0(%arg0: i32, %arg1: i32) -> (i32, i32, i32) {
    %c0_i32 = arith.constant 0 : i32
    %c0_i32_0 = arith.constant 0 : i32
    return %arg0, %arg1, %c0_i32 : i32, i32, i32
  }
  func.func @transform_1(%arg0: i32, %arg1: i32) -> (i32, i32) {
    %c0_i32 = arith.constant 0 : i32
    %c0_i32_0 = arith.constant 0 : i32
    return %arg1, %c0_i32 : i32, i32
  }
  func.func @transform_2(%arg0: i32, %arg1: i32) -> (i32, i32, i32) {
    %c0_i32 = arith.constant 0 : i32
    %c0_i32_0 = arith.constant 0 : i32
    return %arg0, %arg1, %c0_i32 : i32, i32, i32
  }
}

</mosaic_0001>

<bundles_post_ra>
// kernel: tpu_custom_call.1
= control target key start
LH: loop header
LB: loop body
LE: loop exit
PB: predicated region body
PF: predicated region fallthrough
CT: control target
= control target key end

     0   :  { %7 = vsyncpa [#allocation3], 0  ;;  %s751_s0 = inlined_call_operand.hbm [shape: f32[2,8,32], index: 0, kind: input, shape index: {}]   ;;  %s752_s1 = inlined_call_operand.hbm [shape: f32[8,32], index: 1, kind: input, shape index: {}]   ;;  %s753_s2 = inlined_call_operand.hbm [shape: f32[2,8,32], index: 2, kind: output, shape index: {}]  }
   0x1   :  { %9 = vsyncpa [#allocation3 + $0x1], 0 }
   0x2   :  { %10 = vsyncpa [#allocation6], 0 }
   0x3   :  { %11 = vsyncpa [#allocation4], 0 }
   0x4   :  { %13 = vsyncpa [#allocation4 + $0x1], 0  ;;  %s584_s9 = smov 0   ;;  %s586_s10 = smov 0  }
   0x5   :  { %s588_s11 = smov 0   ;;  %s590_s12 = smov 0  }
   0x6   :  { %s592_s13 = smov 0   ;;  %s594_s14 = smov 0  }
   0x7 LB: > { %s334_s15 = sadd.s32 4294967295, %s562_s14   ;;  %s335_s16 = sadd.s32 4294967294, %s562_s14   ;;  %s562_s14 = sphi %s594_s14, %s19_s14   ;;  %s558_s13 = sphi %s592_s13, %s770_s13   ;;  %s554_s12 = sphi %s590_s12, %s769_s12   ;;  %s550_s11 = sphi %s588_s11, %s768_s11   ;;  %s546_s10 = sphi %s586_s10, %s767_s10   ;;  %s542_s9 = sphi %s584_s9, %s766_s9  }
   0x8   : > { %p53_p0 = scmp.ne.s32.totalorder %s546_s10, %s542_s9  ;;  %p618_p1 = scmp.eq.s32.totalorder %s334_s15, 0 }
   0x9   : > { %p622_p2 = scmp.eq.s32.totalorder %s334_s15, 1  ;;  %p111_p3 = scmp.eq.s32.totalorder %s335_s16, 1 }
   0xa   : > { %p628_p4 = por %p618_p1, %p53_p0  ;;  %p336_p5 = scmp.ge.s32.totalorder %s562_s14, 1 }
   0xb   : > { %p633_p6 = por %p111_p3, %p53_p0  ;;  %p118_p7 = scmp.lt.s32.totalorder %s562_s14, 3 }
   0xc   : > { %s757_s19 = scalar_select %p628_p4, 1, 0 }
   0xd   : > { %s758_s20 = scalar_select %p633_p6, 1, 0 }
   0xe   : > { %p638_p8 = pnand %p336_p5, %p118_p7  ;;  %s564_s22 = smov [#allocation5]  }
   0xf   : > { %s133_s23 = sshll.u32 %s564_s22, 4  ;;  %s31_s25 = sadd.s32 1, %s558_s13  ;;  %s134_s23 = int_to_ptr.vmem [resolvable:$true] %s133_s23 }
  0x10   : > { %p357_p10 = pneg %p638_p8  ;;  %s40_s26 = sadd.s32 1, %s550_s11 }
  0x11   : > { %p33_p12 = scmp.ge.s32.totalorder %s31_s25, 2  ;;  %s435_s27 = scalar_lea.vmem %s134_s23, 128 }
  0x12   : > { %p647_p11 = pnand %p357_p10, %p618_p1  ;;  %p436_p0 = scmp.ne.s32.totalorder %s134_s23, %s435_s27 }
  0x13   : > { %p443_p7 = scmp.lt.s32.totalorder %s134_s23, %s134_s23  ;;  %p444_p6 = scmp.lt.s32.totalorder %s435_s27, %s435_s27 }
  0x14   : > { %p426_p13 = pneg %p647_p11 }
  0x15   : > { %p445_p9 = por %p444_p6, %p443_p7 }
  0x16   : > { %p438_p3 = pnand %p436_p0, %p426_p13 }
  0x18   : > { %p439_p5 = pneg %p438_p3 }
  0x1a   : > { %p446_p4 = pnand %p445_p9, %p439_p5 }
  0x1c   : > { %449 = shalt.err (!%p446_p4)
}
  0x1d   : > { %360 = dma.hbm_to_vmem [thread:$0]  (!%p647_p11), %s752_s1, 128, %s134_s23, [#allocation6]  }
  0x1e   : > { %s772_s25 = smov (%p33_p12, %s31_s25), 0  ;;  %p47_p6 = scmp.ne.s32.totalorder %s550_s11, %s546_s10 }
  0x1f   : > { %p48_p4 = scmp.eq.s32.totalorder %s562_s14, 0  ;;  %s35_s30 = ssub.s32 %s558_s13, %s772_s25 }
  0x20   : > { %p370_p9 = scmp.lt.s32.totalorder %s562_s14, 2  ;;  %p38_p10 = scmp.eq.s32.totalorder %s35_s30, 0 }
  0x21   : > { %p49_p13 = por %p48_p4, %p47_p6  ;;  %p670_p0 = por %p622_p2, %p47_p6 }
  0x22   : > { %s144_s4 = sand.u32 1, %s550_s11   ;;  %s340_s7 = sshll.u32 %s558_s13, 7 }
  0x23   : > { %s676_s5 = scalar_select %p38_p10, %s550_s11, %s40_s26  }
  0x24   : > { %s339_s6 = sshll.u32 %s144_s4, 3  ;;  %s154_s16 = scalar_lea.hbm %s751_s0, %s340_s7 }
  0x25   : > { %s148_s22 = scalar_lea.vmem [#allocation2], %s339_s6  ;;  %p682_p11 = pnand %p370_p9, %p49_p13 }
  0x26   : > { %s156_s23 = sshll.u32 %s148_s22, 4  ;;  %s145_s18 = scalar_lea.sflag [#allocation3], %s144_s4  ;;  %s157_s23 = int_to_ptr.vmem [resolvable:$true] %s156_s23 }
  0x27   : > { %p452_p2 = pneg %p682_p11  ;;  %s463_s27 = scalar_lea.vmem %s157_s23, 128 }
  0x28   : > { %p464_p12 = scmp.ne.s32.totalorder %s157_s23, %s463_s27  ;;  %s565_s26 = smov [#allocation2]  }
  0x29   : > { %s468_s28 = sshll.u32 %s565_s26, 4  ;;  %s469_s28 = int_to_ptr.vmem [resolvable:$false] %s468_s28 }
  0x2a   : > { %p466_p3 = pnand %p464_p12, %p452_p2  ;;  %s470_s29 = scalar_lea.vmem %s469_s28, 256 }
  0x2b   : > { %p471_p7 = scmp.lt.s32.totalorder %s157_s23, %s469_s28  ;;  %p472_p6 = scmp.lt.s32.totalorder %s470_s29, %s463_s27 }
  0x2c   : > { %p467_p5 = pneg %p466_p3 }
  0x2d   : > { %p473_p4 = por %p472_p6, %p471_p7 }
  0x2f   : > { %p474_p10 = pnand %p473_p4, %p467_p5 }
  0x31   : > { %477 = shalt.err (!%p474_p10)
}
  0x32   : > { %364 = dma.hbm_to_vmem [thread:$0]  (!%p682_p11), %s154_s16, 128, %s157_s23, %s145_s18  }
  0x33   : > { %165 = sbr.rel (%p638_p8) target bundleno = 422 (0x1a6), region = 28  ;;  %s693_s30 = sand.u32 (!%p638_p8), 1, %s546_s10  }
  0x34   : > { %s342_s4 = sshll.u32 (!%p638_p8), %s693_s30, 3  ;;  %s168_s6 = scalar_lea.sflag (!%p638_p8), [#allocation3], %s693_s30 }
  0x35   : > { %s171_s7 = scalar_lea.vmem (!%p638_p8), [#allocation2], %s342_s4  ;;  %p763_p9 = scmp.ne.s32.totalorder (!%p638_p8), %s757_s19, 0 }
  0x38   : > { %529 = dma.done.wait (%p763_p9), %s168_s6, 128  }
  0x39   : > { %531 = vsyncadd (%p763_p9), %s168_s6, 4294967168 }
  0x3a   : > { %533 = dma.done.wait (%p618_p1), [#allocation6], 128  }
  0x3b   : > { %535 = vsyncadd (%p618_p1), [#allocation6], 4294967168  ;;  %v197_v0 = vld [vmem:[#allocation5] sm:$0xff]  ;;  %s566_s21 = smov 16   ;;  %s567_s8 = smov 112   ;;  %v196_v1 = vld [vmem:[%s171_s7] sm:$0xff] }
  0x3c   : > { %212 = vrot.lane.b32.xlu0 %v197_v0, %s566_s21  ;;  %v198_v2 = vadd.f32 %v197_v0, %v196_v1  ;;  %vm205_vm0 = vcmask 130048   ;;  %s195_s17 = scalar_lea.vmem [#allocation7], %s342_s4  ;;  %s346_s19 = sshll.u32 %s554_s12, 7  ;;  %vm225_vm1 = vcmask 261248  }
  0x3d   : > { %s242_s15 = sshll.u32 %s195_s17, 4  ;;  %s709_s23 = scalar_lea.hbm %s753_s2, %s346_s19  ;;  %s243_s15 = int_to_ptr.vmem [resolvable:$true] %s242_s15 }
  0x3e   : > { %v199_v5 = vmul.f32 %v198_v2, %v197_v0  ;;  %s228_s24 = scalar_lea.sflag [#allocation4], %s693_s30  ;;  %s478_s18 = scalar_lea.vmem %s243_s15, 128 }
  0x3f   : > { %p479_p1 = scmp.ne.s32.totalorder %s243_s15, %s478_s18  ;;  %s568_s27 = smov [#allocation7]  }
  0x40   : > { %208 = vrot.lane.b32.xlu0 %v197_v0, %s567_s8  ;;  %s482_s26 = sshll.u32 %s568_s27, 4  ;;  %s483_s26 = int_to_ptr.vmem [resolvable:$false] %s482_s26 }
  0x41   : > { %p480_p8 = pnand %p479_p1, %p670_p0  ;;  %s484_s12 = scalar_lea.vmem %s483_s26, 256 }
  0x42   : > { %p485_p11 = scmp.lt.s32.totalorder %s243_s15, %s483_s26  ;;  %p486_p2 = scmp.lt.s32.totalorder %s484_s12, %s478_s18 }
  0x43   : > { %p481_p13 = pneg %p480_p8 }
  0x44   : > { %p487_p12 = por %p486_p2, %p485_p11 }
  0x46   : > { %p488_p3 = pnand %p487_p12, %p481_p13 }
  0xae   : > { %v213_v3 = vpop.permute.xlu0 %212 }
  0xaf   : > { %v215_v4 = vmul.f32 %v213_v3, %v198_v2 }
  0xb1   : > { %217 = vrot.lane.b32.xlu1 %v215_v4, %s567_s8 }
  0xb2   : > { %v209_v6 = vpop.permute.xlu0 %208 }
  0xb3   : > { %v211_v7 = vmul.f32 %v209_v6, %v198_v2 }
  0xb5   : > { %201 = vrot.lane.b32.xlu1 %v199_v5, %s567_s8 }
 0x123   : > { %v218_v8 = vpop.permute.xlu1 %217 }
 0x124   : > { %v220_v9 = vadd.f32 %v218_v8, %v211_v7 }
 0x126   : > { %222 = vrot.lane.b32.xlu0 %v220_v9, %s566_s21 }
 0x127   : > { %v202_v10 = vpop.permute.xlu1 %201 }
 0x128   : > { %v204_v11 = vsub.f32 %v199_v5, %v202_v10 }
 0x12a   : > { %206 = vst.msk [vmem:[%s195_s17] sm:$0xff] %vm205_vm0, %v204_v11 }
 0x198   : > { %v223_v12 = vpop.permute.xlu0 %222 }
 0x199   : > { %226 = vst.msk [vmem:[%s195_s17] sm:$0xff] %vm225_vm1, %v223_v12 }
 0x19a   : > { %491 = shalt.err (!%p488_p3)
}
 0x19b   : > { %s492_s28 = scalar_lea.hbm %s709_s23, 128  ;;  %s496_s4 = scalar_lea.hbm %s753_s2, 256 }
 0x19c   : > { %p493_p5 = scmp.ne.s32.totalorder %s709_s23, %s492_s28  ;;  %p497_p4 = scmp.lt.s32.totalorder %s709_s23, %s753_s2 }
 0x19d   : > { %p498_p10 = scmp.lt.s32.totalorder %s496_s4, %s492_s28 }
 0x19e   : > { %p494_p7 = pnand %p493_p5, %p670_p0 }
 0x19f   : > { %p499_p9 = por %p498_p10, %p497_p4 }
 0x1a0   : > { %p495_p6 = pneg %p494_p7 }
 0x1a2   : > { %p500_p1 = pnand %p499_p9, %p495_p6 }
 0x1a4   : > { %503 = shalt.err (!%p500_p1)
}
 0x1a5   : > { %355 = dma.vmem_to_hbm [thread:$0]  (%p670_p0), %s243_s15, 128, %s709_s23, %s228_s24  }
 0x1a6 PF: > { %s254_s21 = sand.u32 1, %s542_s9   ;;  %p764_p8 = scmp.ne.s32.totalorder %s758_s20, 0 }
 0x1a7   : > { %p765_p13 = scmp.ge.s32.totalorder %s562_s14, 2  ;;  %s255_s8 = scalar_lea.sflag [#allocation4], %s254_s21 }
 0x1a9   : > { %p366_p11 = pnand %p765_p13, %p764_p8 }
 0x1ab   : > { %p367_p2 = pneg %p366_p11 }
 0x1ad   : > { %537 = dma.done.wait (%p367_p2), %s255_s8, 128  }
 0x1ae   : > { %539 = vsyncadd (%p367_p2), %s255_s8, 4294967168  ;;  %s19_s14 = sadd.s32 1, %s562_s14   ;;  %s766_s9 = smov %s546_s10 }
 0x1af   : > { %p16_p12 = scmp.ge.s32.totalorder %s19_s14, 4   ;;  %s767_s10 = smov %s550_s11 }
 0x1b0   : > { %s768_s11 = smov %s676_s5  ;;  %s769_s12 = smov %s558_s13 }
 0x1b1   : > { %s770_s13 = smov %s772_s25  ;;  %18 = sbr.rel (!%p16_p12) target bundleno = 7 (0x7), region = 78 }
 0x1b6   :  { %260 = vsyncpa [#allocation3], 1 }
 0x1b7   :  { %262 = vsyncpa [#allocation3 + $0x1], 1 }
 0x1b8   :  { %263 = vsyncpa [#allocation6], 1 }
 0x1b9   :  { %264 = vsyncpa [#allocation4], 1 }
 0x1ba   :  { %266 = vsyncpa [#allocation4 + $0x1], 1 }

</bundles_post_ra>
